<compile_context>
chip_gen: v5e
topology: v5e:2x2
jax: 0.10.0
libtpu: 0.0.40
codegen_flags: <defaults>
</compile_context>

<pallas_src>
import functools

import jax
import jax.numpy as jnp
import numpy as np
from jax.experimental import pallas as pl
from jax.experimental.pallas import tpu as pltpu


def fcomb_kernel(x_ref, b1_ref, w1_ref, w2_ref, b2_ref, w3_ref, b3_ref, o_ref,
                 *, final_relu):
    """One (C, tm) pixel tile through (1x1 conv + BN + ReLU) x 3, channels-first.

    x_ref : (1, C, tm)    feature-map tile (bf16)
    b1_ref: (1, c1, 1)    per-batch bias = conv1 bias + folded z @ W1_z^T (f32)
    w1_ref: (c1, C)       folded conv+BN weights, layer 1 (bf16)
    w2_ref: (c2, c1)      folded conv+BN weights, layer 2 (f32)
    b2_ref: (c2, 1)       folded conv+BN bias,    layer 2 (f32)
    w3_ref: (nc, c2)      folded conv+BN weights, layer 3 (f32)
    b3_ref: (nc, 1)       folded conv+BN bias,    layer 3 (f32)
    o_ref : (1, nc, tm)
    """
    x = x_ref[0]                                                    # (C, tm)

    # layer 1: 1x1 conv + BN + ReLU (latent/z term already folded into b1)
    h = jnp.dot(w1_ref[...], x, preferred_element_type=jnp.float32)
    h = jnp.maximum(h + b1_ref[0], 0.0)                             # f32, no repack

    # layer 2: 1x1 conv + BN + ReLU (pure f32 dot; MXU has slack at K=32)
    h = jnp.dot(w2_ref[...], h, preferred_element_type=jnp.float32)
    h = jnp.maximum(h + b2_ref[...], 0.0)

    # layer 3 (last layer): 1x1 conv + BN + activation
    h = jnp.dot(w3_ref[...], h, preferred_element_type=jnp.float32)
    h = h + b3_ref[...]
    if final_relu:
        h = jnp.maximum(h, 0.0)

    o_ref[0] = h.astype(o_ref.dtype)                                # lane-dense store


def _tpu_cores_per_chip():
    """2 TensorCores on v7x, 1 on v5e/v6e; default 1 if unknown."""
    try:
        kind = getattr(jax.devices()[0], "device_kind", "") or ""
        if "v7" in kind.lower():
            return 2
    except Exception:  # non-TPU / query failure -> conservative default
        pass
    return 1


def _pick_tile(hw, batch, *, max_tm=8192, num_cores=1):
    """Pick pixels-per-tile: largest multiple-of-128 divisor of hw (<= max_tm)
    that leaves enough grid steps.  Single-core parts only need 2 steps for
    double-buffer overlap; multi-core parts want >= 2*cores steps and a step
    count divisible by the core count so TensorCores split evenly."""
    cands = [t for t in range(128, min(hw, max_tm) + 1, 128) if hw % t == 0]
    if not cands:
        return hw  # caller guarantees hw % 128 == 0, so this never triggers

    min_steps = 2 if num_cores <= 1 else 2 * num_cores
    steps = lambda t: batch * (hw // t)

    pref = [t for t in cands if steps(t) >= min_steps and steps(t) % num_cores == 0]
    if pref:
        return max(pref)
    ok = [t for t in cands if steps(t) >= min_steps]
    if ok:
        return max(ok)
    return max(cands)


def fcomb_forward(feature_map, z, params, *, compute_dtype=jnp.bfloat16,
                  out_dtype=jnp.bfloat16, max_tm=8192, final_activation="relu",
                  input_buffer_count=None):
    """feature_map: (B, 32, H, W) NCHW; z: (B, latent_dim). Returns NCHW output."""
    (w1, b1), (w2, b2), (w3, b3) = params      # w: (c_out, c_in), b: (c_out,)
    B, C, H, W = feature_map.shape
    L = z.shape[1]
    c1, c2, nc = w1.shape[0], w2.shape[0], w3.shape[0]
    assert w1.shape[1] == C + L
    cd = compute_dtype

    # Fold the latent channels of conv1 into a per-batch bias:
    #   W1 @ concat(feat, z_bcast) == W1[:, :C] @ feat + W1[:, C:] @ z  (per pixel)
    w1_f = w1[:, :C].astype(cd)                                     # (c1, C)
    zb = jnp.dot(z.astype(cd), w1[:, C:].T.astype(cd),
                 preferred_element_type=jnp.float32)                # (B, c1)
    b1_total = (zb + b1[None, :]).astype(jnp.float32)[:, :, None]   # (B, c1, 1)

    # NCHW is already channels-first: reshape (no copy) to (B, C, H*W); pad the
    # pixel axis to a multiple of 128 so every store is unmasked / lane-dense.
    hw = H * W
    hw_pad = 128 * pl.cdiv(hw, 128)
    x = feature_map.reshape(B, C, hw).astype(cd)
    if hw_pad != hw:
        x = jnp.pad(x, ((0, 0), (0, 0), (0, hw_pad - hw)))

    tm = _pick_tile(hw_pad, B, max_tm=max_tm, num_cores=_tpu_cores_per_chip())
    assert hw_pad % tm == 0
    grid = (B, hw_pad // tm)
    full = lambda b, p: (0, 0)

    x_spec_kwargs = {}
    if input_buffer_count is not None and input_buffer_count != 2:
        # Optional deeper pipelining on the streamed feature map (sweepable).
        x_spec_kwargs["pipeline_mode"] = pl.Buffered(input_buffer_count)

    out = pl.pallas_call(
        functools.partial(fcomb_kernel, final_relu=(final_activation == "relu")),
        out_shape=jax.ShapeDtypeStruct((B, nc, hw_pad), out_dtype),
        grid_spec=pltpu.PrefetchScalarGridSpec(
            num_scalar_prefetch=0,
            grid=grid,
            in_specs=[
                pl.BlockSpec((1, C, tm), lambda b, p: (b, 0, p),    # feature tile
                             **x_spec_kwargs),
                pl.BlockSpec((1, c1, 1), lambda b, p: (b, 0, 0)),   # per-batch bias
                pl.BlockSpec((c1, C), full),
                pl.BlockSpec((c2, c1), full),
                pl.BlockSpec((c2, 1), full),
                pl.BlockSpec((nc, c2), full),
                pl.BlockSpec((nc, 1), full),
            ],
            out_specs=pl.BlockSpec((1, nc, tm), lambda b, p: (b, 0, p)),
        ),
        compiler_params=pltpu.CompilerParams(
            dimension_semantics=("parallel", "parallel")),
    )(x, b1_total, w1_f,
      w2.astype(jnp.float32), b2.reshape(c2, 1).astype(jnp.float32),
      w3.astype(jnp.float32), b3.reshape(nc, 1).astype(jnp.float32))

    if hw_pad != hw:
        out = out[:, :, :hw]
    return out.reshape(B, nc, H, W)                                 # already NCHW


def fold_conv_bn(key, c_in, c_out, eps=1e-5):
    """Deterministic 1x1-conv + BatchNorm(eval) params folded into (W, b).

    W is stored as (c_out, c_in) — the PyTorch conv weight with the 1x1 spatial
    dims squeezed.  BN at fresh init (gamma=1, beta=0, mean=0, var=1) is
    identity up to eps, still folded for generality.
    TODO(synk): training-mode BN (batch statistics) is not representable in
    this folded eval form.
    """
    kw, kb = jax.random.split(key)
    w = jax.random.normal(kw, (c_out, c_in), jnp.float32) * (1.0 / np.sqrt(c_in))
    conv_b = jax.random.normal(kb, (c_out,), jnp.float32) * 0.01
    gamma = jnp.ones((c_out,), jnp.float32)
    beta = jnp.zeros((c_out,), jnp.float32)
    mean = jnp.zeros((c_out,), jnp.float32)
    var = jnp.ones((c_out,), jnp.float32)
    scale = gamma / jnp.sqrt(var + eps)
    w_eff = w * scale[:, None]
    b_eff = (conv_b - mean) * scale + beta
    return w_eff, b_eff


def fcomb_reference(feature_map, z, params, *, compute_dtype=jnp.bfloat16,
                    out_dtype=jnp.bfloat16, final_activation="relu"):
    """Plain-JAX version of the original module's forward pass (broadcast z,
    concat on channels, three 1x1 conv+BN+act), with the same precision points
    as the kernel (bf16 inputs / f32 accumulate on layer 1, f32 thereafter)."""
    (w1, b1), (w2, b2), (w3, b3) = params
    B, C, H, W = feature_map.shape
    L = z.shape[1]
    cd = compute_dtype
    z_b = jnp.broadcast_to(z[:, :, None, None], (B, L, H, W))
    x = jnp.concatenate([feature_map.astype(cd), z_b.astype(cd)], axis=1)
    h = x.reshape(B, C + L, H * W)

    h = jnp.einsum('oc,bcp->bop', w1.astype(cd), h,
                   preferred_element_type=jnp.float32)
    h = jnp.maximum(h + b1[None, :, None], 0.0)
    h = jnp.einsum('oc,bcp->bop', w2.astype(jnp.float32), h,
                   preferred_element_type=jnp.float32)
    h = jnp.maximum(h + b2[None, :, None], 0.0)
    h = jnp.einsum('oc,bcp->bop', w3.astype(jnp.float32), h,
                   preferred_element_type=jnp.float32)
    h = h + b3[None, :, None]
    if final_activation == "relu":
        h = jnp.maximum(h, 0.0)
    return h.astype(out_dtype).reshape(B, -1, H, W)


if __name__ == "__main__":
    # Small shapes consistent with the module: the combiner always sees a
    # 32-channel feature map (fixed by the module's conv definitions).
    B, H, W = 2, 32, 32
    num_feat_channels = 32
    latent_dim = 6
    num_classes = 4

    key = jax.random.PRNGKey(0)
    k_fm, k_z, k1, k2, k3 = jax.random.split(key, 5)

    # Upstream (the U-Net decoder) is assumed to hand over bf16 activations;
    # folded conv+BN params are kept in f32 and cast once at call time.
    feature_map = jax.random.normal(
        k_fm, (B, num_feat_channels, H, W), jnp.float32).astype(jnp.bfloat16)
    z = jax.random.normal(k_z, (B, latent_dim), jnp.float32)

    params = (
        fold_conv_bn(k1, num_feat_channels + latent_dim, 32),   # resnet_block_1
        fold_conv_bn(k2, 32, 16),                               # resnet_block_2
        fold_conv_bn(k3, 16, num_classes),                      # conv_block_1 (last)
    )

    out = fcomb_forward(feature_map, z, params)
    out = jax.block_until_ready(out)

    ref = fcomb_reference(feature_map, z, params)
    assert out.shape == (B, num_classes, H, W)
    np.testing.assert_allclose(np.asarray(out, dtype=np.float32),
                               np.asarray(ref, dtype=np.float32),
                               rtol=2e-2, atol=2e-2)

    print("KERNEL_OK")
</pallas_src>

<mosaic_0001>
module attributes {stable_mosaic.version = 11 : i64} {
  func.func @fcomb_kernel(%arg0: i32, %arg1: i32, %arg2: memref<1x32x1024xbf16, #tpu.memory_space<vmem>>, %arg3: memref<1x32x1xf32, #tpu.memory_space<vmem>>, %arg4: memref<32x32xbf16, #tpu.memory_space<vmem>>, %arg5: memref<16x32xf32, #tpu.memory_space<vmem>>, %arg6: memref<16x1xf32, #tpu.memory_space<vmem>>, %arg7: memref<4x16xf32, #tpu.memory_space<vmem>>, %arg8: memref<4x1xf32, #tpu.memory_space<vmem>>, %arg9: memref<1x4x1024xbf16, #tpu.memory_space<vmem>>) attributes {dimension_semantics = [#tpu.dimension_semantics<parallel>, #tpu.dimension_semantics<parallel>], iteration_bounds = array<i64: 2, 1>, scalar_prefetch = 0 : i64, scratch_operands = 0 : i64, tpu.core_type = #tpu.core_type<tc>, window_params = [{transform_indices = @transform_0, window_bounds = array<i64: 1, 32, 1024>}, {transform_indices = @transform_1, window_bounds = array<i64: 1, 32, 1>}, {pipeline_mode = #tpu.pipeline_mode<synchronous>, transform_indices = @transform_2, window_bounds = array<i64: 32, 32>}, {pipeline_mode = #tpu.pipeline_mode<synchronous>, transform_indices = @transform_3, window_bounds = array<i64: 16, 32>}, {pipeline_mode = #tpu.pipeline_mode<synchronous>, transform_indices = @transform_4, window_bounds = array<i64: 16, 1>}, {pipeline_mode = #tpu.pipeline_mode<synchronous>, transform_indices = @transform_5, window_bounds = array<i64: 4, 16>}, {pipeline_mode = #tpu.pipeline_mode<synchronous>, transform_indices = @transform_6, window_bounds = array<i64: 4, 1>}, {transform_indices = @transform_7, window_bounds = array<i64: 1, 4, 1024>}]} {
    %c0 = arith.constant 0 : index
    %c0_0 = arith.constant 0 : index
    %c0_1 = arith.constant 0 : index
    %0 = vector.load %arg2[%c0, %c0_0, %c0_1] : memref<1x32x1024xbf16, #tpu.memory_space<vmem>>, vector<1x32x1024xbf16>
    %1 = vector.shape_cast %0 : vector<1x32x1024xbf16> to vector<32x1024xbf16>
    %c0_2 = arith.constant 0 : index
    %c0_3 = arith.constant 0 : index
    %2 = vector.load %arg4[%c0_2, %c0_3] : memref<32x32xbf16, #tpu.memory_space<vmem>>, vector<32x32xbf16>
    %cst = arith.constant dense<0.000000e+00> : vector<32x1024xf32>
    %3 = tpu.matmul %2, %1, %cst {dimension_numbers = #tpu.dot_dimension_numbers<[1], [0], [0], [1], [0, 0, 1, 1], [], []>} : vector<32x32xbf16>, vector<32x1024xbf16>, vector<32x1024xf32> -> vector<32x1024xf32>
    %c0_4 = arith.constant 0 : index
    %c0_5 = arith.constant 0 : index
    %c0_6 = arith.constant 0 : index
    %4 = vector.load %arg3[%c0_4, %c0_5, %c0_6] : memref<1x32x1xf32, #tpu.memory_space<vmem>>, vector<1x32x1xf32>
    %5 = vector.shape_cast %4 : vector<1x32x1xf32> to vector<32x1xf32>
    %6 = vector.broadcast %5 : vector<32x1xf32> to vector<32x1024xf32>
    %7 = arith.addf %3, %6 : vector<32x1024xf32>
    %cst_7 = arith.constant 0.000000e+00 : f32
    %8 = vector.broadcast %cst_7 : f32 to vector<32x1024xf32>
    %9 = arith.maximumf %7, %8 : vector<32x1024xf32>
    %c0_8 = arith.constant 0 : index
    %c0_9 = arith.constant 0 : index
    %10 = vector.load %arg5[%c0_8, %c0_9] : memref<16x32xf32, #tpu.memory_space<vmem>>, vector<16x32xf32>
    %cst_10 = arith.constant dense<0.000000e+00> : vector<16x1024xf32>
    %11 = tpu.matmul %10, %9, %cst_10 {dimension_numbers = #tpu.dot_dimension_numbers<[1], [0], [0], [1], [0, 0, 1, 1], [], []>} : vector<16x32xf32>, vector<32x1024xf32>, vector<16x1024xf32> -> vector<16x1024xf32>
    %c0_11 = arith.constant 0 : index
    %c0_12 = arith.constant 0 : index
    %12 = vector.load %arg6[%c0_11, %c0_12] : memref<16x1xf32, #tpu.memory_space<vmem>>, vector<16x1xf32>
    %13 = vector.broadcast %12 : vector<16x1xf32> to vector<16x1024xf32>
    %14 = arith.addf %11, %13 : vector<16x1024xf32>
    %cst_13 = arith.constant 0.000000e+00 : f32
    %15 = vector.broadcast %cst_13 : f32 to vector<16x1024xf32>
    %16 = arith.maximumf %14, %15 : vector<16x1024xf32>
    %c0_14 = arith.constant 0 : index
    %c0_15 = arith.constant 0 : index
    %17 = vector.load %arg7[%c0_14, %c0_15] : memref<4x16xf32, #tpu.memory_space<vmem>>, vector<4x16xf32>
    %cst_16 = arith.constant dense<0.000000e+00> : vector<4x1024xf32>
    %18 = tpu.matmul %17, %16, %cst_16 {dimension_numbers = #tpu.dot_dimension_numbers<[1], [0], [0], [1], [0, 0, 1, 1], [], []>} : vector<4x16xf32>, vector<16x1024xf32>, vector<4x1024xf32> -> vector<4x1024xf32>
    %c0_17 = arith.constant 0 : index
    %c0_18 = arith.constant 0 : index
    %19 = vector.load %arg8[%c0_17, %c0_18] : memref<4x1xf32, #tpu.memory_space<vmem>>, vector<4x1xf32>
    %20 = vector.broadcast %19 : vector<4x1xf32> to vector<4x1024xf32>
    %21 = arith.addf %18, %20 : vector<4x1024xf32>
    %cst_19 = arith.constant 0.000000e+00 : f32
    %22 = vector.broadcast %cst_19 : f32 to vector<4x1024xf32>
    %23 = arith.maximumf %21, %22 : vector<4x1024xf32>
    %24 = arith.truncf %23 : vector<4x1024xf32> to vector<4x1024xbf16>
    %c0_20 = arith.constant 0 : index
    %c0_21 = arith.constant 0 : index
    %c0_22 = arith.constant 0 : index
    %25 = vector.load %arg9[%c0_20, %c0_21, %c0_22] : memref<1x4x1024xbf16, #tpu.memory_space<vmem>>, vector<1x4x1024xbf16>
    %26 = vector.shape_cast %25 : vector<1x4x1024xbf16> to vector<4x1024xbf16>
    %27 = vector.shape_cast %24 : vector<4x1024xbf16> to vector<1x4x1024xbf16>
    tpu.vector_store %arg9[%c0_20, %c0_21, %c0_22], %27 {strides = array<i32>} : memref<1x4x1024xbf16, #tpu.memory_space<vmem>>, vector<1x4x1024xbf16>,
    return
  }
  func.func @transform_0(%arg0: i32, %arg1: i32) -> (i32, i32, i32) {
    %c0_i32 = arith.constant 0 : i32
    %c0_i32_0 = arith.constant 0 : i32
    return %arg0, %c0_i32, %arg1 : i32, i32, i32
  }
  func.func @transform_1(%arg0: i32, %arg1: i32) -> (i32, i32, i32) {
    %c0_i32 = arith.constant 0 : i32
    %c0_i32_0 = arith.constant 0 : i32
    %c0_i32_1 = arith.constant 0 : i32
    return %arg0, %c0_i32, %c0_i32_0 : i32, i32, i32
  }
  func.func @transform_2(%arg0: i32, %arg1: i32) -> (i32, i32) {
    %c0_i32 = arith.constant 0 : i32
    %c0_i32_0 = arith.constant 0 : i32
    %c0_i32_1 = arith.constant 0 : i32
    return %c0_i32, %c0_i32_0 : i32, i32
  }
  func.func @transform_3(%arg0: i32, %arg1: i32) -> (i32, i32) {
    %c0_i32 = arith.constant 0 : i32
    %c0_i32_0 = arith.constant 0 : i32
    %c0_i32_1 = arith.constant 0 : i32
    return %c0_i32, %c0_i32_0 : i32, i32
  }
  func.func @transform_4(%arg0: i32, %arg1: i32) -> (i32, i32) {
    %c0_i32 = arith.constant 0 : i32
    %c0_i32_0 = arith.constant 0 : i32
    %c0_i32_1 = arith.constant 0 : i32
    return %c0_i32, %c0_i32_0 : i32, i32
  }
  func.func @transform_5(%arg0: i32, %arg1: i32) -> (i32, i32) {
    %c0_i32 = arith.constant 0 : i32
    %c0_i32_0 = arith.constant 0 : i32
    %c0_i32_1 = arith.constant 0 : i32
    return %c0_i32, %c0_i32_0 : i32, i32
  }
  func.func @transform_6(%arg0: i32, %arg1: i32) -> (i32, i32) {
    %c0_i32 = arith.constant 0 : i32
    %c0_i32_0 = arith.constant 0 : i32
    %c0_i32_1 = arith.constant 0 : i32
    return %c0_i32, %c0_i32_0 : i32, i32
  }
  func.func @transform_7(%arg0: i32, %arg1: i32) -> (i32, i32, i32) {
    %c0_i32 = arith.constant 0 : i32
    %c0_i32_0 = arith.constant 0 : i32
    return %arg0, %c0_i32, %arg1 : i32, i32, i32
  }
}

</mosaic_0001>

<bundles_post_ra>
// kernel: tpu_custom_call.1
= control target key start
LH: loop header
LB: loop body
LE: loop exit
PB: predicated region body
PF: predicated region fallthrough
CT: control target
= control target key end

     0   :  { %12 = vsyncpa [#allocation3], 0  ;;  %s1904_s0 = inlined_call_operand.hbm [shape: bf16[2,32,1024], index: 0, kind: input, shape index: {}]   ;;  %s1905_s1 = inlined_call_operand.vmem [shape: f32[2,32,1], index: 1, kind: input, shape index: {}]   ;;  %s1906_s2 = inlined_call_operand.vmem [shape: bf16[32,32], index: 2, kind: input, shape index: {}]   ;;  %s1907_s3 = inlined_call_operand.vmem [shape: f32[16,32], index: 3, kind: input, shape index: {}]   ;;  %s1908_s4 = inlined_call_operand.vmem [shape: f32[16,1], index: 4, kind: input, shape index: {}]   ;;  %s1909_s5 = inlined_call_operand.vmem [shape: f32[4,16], index: 5, kind: input, shape index: {}]   ;;  %s1910_s6 = inlined_call_operand.vmem [shape: f32[4,1], index: 6, kind: input, shape index: {}]   ;;  %s1911_s7 = inlined_call_operand.hbm [shape: bf16[2,4,1024], index: 7, kind: output, shape index: {}]  }
   0x1   :  { %14 = vsyncpa [#allocation3 + $0x1], 0 }
   0x2   :  { %15 = vsyncpa [#allocation4], 0 }
   0x3   :  { %17 = vsyncpa [#allocation4 + $0x1], 0  ;;  %s1589_s24 = smov 0   ;;  %s1591_s25 = smov 0  }
   0x4   :  { %s1593_s26 = smov 0   ;;  %s1595_s27 = smov 0  }
   0x5   :  { %s1597_s28 = smov 0   ;;  %s1599_s29 = smov 0  }
   0x6 LB: > { %1914 = sst [smem:[#allocation8_spill]] %s1540_s28  ;;  %s1214_s30 = sadd.s32 4294967295, %s1544_s29   ;;  %s1544_s29 = sphi %s1599_s29, %s23_s29   ;;  %s1540_s28 = sphi %s1597_s28, %s1921_s28   ;;  %s1536_s27 = sphi %s1595_s27, %s1920_s27   ;;  %s1532_s26 = sphi %s1593_s26, %s1924_s26   ;;  %s1528_s25 = sphi %s1591_s25, %s1923_s25   ;;  %s1524_s24 = sphi %s1589_s24, %s1922_s24  }
   0x7   : > { %s1215_s8 = sadd.s32 4294967294, %s1544_s29   ;;  %s35_s9 = sadd.s32 1, %s1540_s28 }
   0x8   : > { %s44_s10 = sadd.s32 1, %s1532_s26  ;;  %p37_p0 = scmp.ge.s32.totalorder %s35_s9, 2 }
   0x9   : > { %p51_p1 = scmp.ne.s32.totalorder %s1532_s26, %s1528_s25  ;;  %p52_p2 = scmp.eq.s32.totalorder %s1544_s29, 0 }
   0xa   : > { %p57_p3 = scmp.ne.s32.totalorder %s1528_s25, %s1524_s24  ;;  %s1926_s9 = smov (%p37_p0, %s35_s9), 0 }
   0xb   : > { %1915 = sst [smem:[#allocation9_spill]] %s1926_s9  ;;  %p1630_p4 = por %p52_p2, %p51_p1 }
   0xc   : > { %p58_p5 = scmp.eq.s32.totalorder %s1214_s30, 0  ;;  %s39_s12 = ssub.s32 %s1540_s28, %s1926_s9 }
   0xd   : > { %p214_p6 = scmp.eq.s32.totalorder %s1214_s30, 1  ;;  %p42_p7 = scmp.eq.s32.totalorder %s39_s12, 0 }
   0xe   : > { %p1636_p8 = por %p58_p5, %p57_p3  ;;  %p220_p10 = scmp.eq.s32.totalorder %s1215_s8, 1 }
   0xf   : > { %p1640_p9 = por %p214_p6, %p51_p1  ;;  %p1217_p12 = scmp.ge.s32.totalorder %s1544_s29, 2 }
  0x10   : > { %s1645_s15 = scalar_select %p42_p7, %s1532_s26, %s44_s10  }
  0x11   : > { %p1647_p11 = por %p220_p10, %p57_p3  ;;  %p1376_p13 = scmp.lt.s32.totalorder %s1544_s29, 2 }
  0x12   : > { %s255_s17 = sand.u32 1, %s1532_s26   ;;  %s1343_s19 = sshll.u32 %s1540_s28, 7 }
  0x13   : > { %s1218_s18 = sshll.u32 %s255_s17, 7  ;;  %s266_s22 = scalar_lea.hbm %s1904_s0, %s1343_s19 }
  0x14   : > { %s259_s23 = scalar_lea.vmem [#allocation2], %s1218_s18  ;;  %s267_s12 = sshll.u32 %s266_s22, 4  ;;  %s268_s12 = int_to_ptr.hbm [resolvable:$true] %s267_s12 }
  0x15   : > { %s269_s30 = sshll.u32 %s259_s23, 4  ;;  %p1369_p0 = pnand %p1376_p13, %p1630_p4  ;;  %s270_s30 = int_to_ptr.vmem [resolvable:$true] %s269_s30 }
  0x16   : > { %p1221_p1 = scmp.ge.s32.totalorder %s1544_s29, 1  ;;  %s256_s8 = scalar_lea.sflag [#allocation3], %s255_s17 }
  0x17   : > { %s1546_s10 = smov 512   ;;  %s1547_s9 = smov 32  }
  0x18   : > { %1371 = dma.hbm_to_vmem [thread:$0]  (!%p1369_p0), %s268_s12, 2048, %s270_s30, %s256_s8, %s1546_s10, %s1546_s10, %s1547_s9  }
  0x19   : > { %p285_p2 = scmp.lt.s32.totalorder %s1544_s29, 3 }
  0x1b   : > { %p286_p3 = pnand %p1221_p1, %p285_p2 }
  0x1c   : > { %s1663_s28 = sand.u32 (!%p286_p3), 1, %s1528_s25  }
  0x1d   : > { %289 = sbr.rel (%p286_p3) target bundleno = 540 (0x21c), region = 48  ;;  %s1222_s18 = sshll.u32 (!%p286_p3), %s1663_s28, 7 }
  0x1e   : > { %s292_s19 = scalar_lea.sflag (!%p286_p3), [#allocation3], %s1663_s28  ;;  %s1667_s20 = scalar_lea.vmem (!%p286_p3), [#allocation2], %s1222_s18 }
  0x22   : > { %1515 = dma.done.wait (%p1636_p8), %s292_s19, 2048  }
  0x23   : > { %1517 = vsyncadd (%p1636_p8), %s292_s19, 4294965248  ;;  %p333_p4 = scmp.lt.s32.totalorder %s1536_s27, 1  ;;  %v1548_v0 = vmov 0   ;;  %v1268_v1 = vld [vmem:[%s1667_s20 + $0x40] sm:$0xf]  ;;  %vm474_vm0 = vcmask 261120  }
  0x24   : > { %1430 = vset.pattern.permute.xlu1 %v1548_v0  ;;  %1429 = vset.pattern.permute.xlu0 %v1548_v0  ;;  %v1357_v2 = vld [vmem:[%s1667_s20 + $0x5c] sm:$0xf0]  ;;  %v1353_v3 = vld [vmem:[%s1667_s20 + $0x44] sm:$0xf]  ;;  %v1276_v6 = vld [vmem:[%s1667_s20 + $0x48] sm:$0xf] }
  0x25   : > { %s334_s9 = scalar_select %p333_p4, %s1536_s27, 1  ;;  %1431 = vset.pattern.permute.xlu2 %v1548_v0  ;;  %v1269_v4 = vor.u32 %v1357_v2, %v1268_v1  ;;  %v1270_v5 = vld [vmem:[%s1667_s20 + $0x60] sm:$0xf0]  ;;  %v1358_v7 = vld [vmem:[%s1667_s20 + $0x64] sm:$0xf0]  ;;  %vm892_vm1 = vcmask 130048  }
  0x26   : > { %v1273_v8 = vor.u32 %v1353_v3, %v1270_v5  ;;  %v1277_v9 = vor.u32 %v1358_v7, %v1276_v6  ;;  %v1354_v10 = vld [vmem:[%s1667_s20 + $0x4c] sm:$0xf]  ;;  %v1236_v12 = vld [vmem:[%s1667_s20] sm:$0xf]  ;;  %v1345_v15 = vld [vmem:[%s1667_s20 + $0x4] sm:$0xf] }
  0x27   : > { %s1344_s11 = sshll.u32 %s334_s9, 5  ;;  %v1278_v11 = vld [vmem:[%s1667_s20 + $0x68] sm:$0xf0]  ;;  %487 = vmatpush.bf16.msra.mxu0 %v1269_v4  ;;  %v1349_v14 = vld [vmem:[%s1667_s20 + $0x1c] sm:$0xf0]  ;;  %s1223_s30 = sshll.u32 %s1663_s28, 4 }
  0x28   : > { %s1687_s21 = scalar_lea.vmem %s1905_s1, %s1344_s11  ;;  %v1281_v13 = vor.u32 %v1354_v10, %v1278_v11  ;;  %v1238_v16 = vld [vmem:[%s1667_s20 + $0x20] sm:$0xf0]  ;;  %506 = vmatpush.bf16.msra.mxu1 %v1273_v8  ;;  %525 = vmatpush.bf16.msra.mxu2 %v1277_v9  ;;  %v1237_v17 = vor.u32 %v1349_v14, %v1236_v12  ;;  %v1244_v19 = vld [vmem:[%s1667_s20 + $0x8] sm:$0xf]  ;;  %v1346_v21 = vld [vmem:[%s1667_s20 + $0xc] sm:$0xf] }
  0x29   : > { %v1241_v18 = vor.u32 %v1345_v15, %v1238_v16  ;;  %v1350_v20 = vld [vmem:[%s1667_s20 + $0x24] sm:$0xf0]  ;;  %v1246_v23 = vld [vmem:[%s1667_s20 + $0x28] sm:$0xf0]  ;;  %v1361_v24 = vld [vmem:[%s1906_s2] sm:$0xff]  ;;  %vm1078_vm2 = vcmask 1041408  }
  0x2a   : > { %544 = vmatpush.bf16.msra.mxu3 %v1281_v13  ;;  %v1245_v22 = vor.u32 %v1350_v20, %v1244_v19  ;;  %v361_v25 = vld [vmem:[%s1687_s21 + $0x8] sm:$0xff]  ;;  %v1249_v26 = vor.u32 %v1346_v21, %v1246_v23  ;;  %v1292_v27 = vld [vmem:[%s1667_s20 + $0x58] sm:$0xf]  ;;  %v1356_v29 = vld [vmem:[%s1667_s20 + $0x5c] sm:$0xf]  ;;  %vm1082_vm3 = vcmask 1045508  }
  0x2b   : > { %371 = vperm.xlu1 %1430, %v361_v25   ;;  %v1360_v28 = vld [vmem:[%s1667_s20 + $0x74] sm:$0xf0]  ;;  %488 = vmatpush.bf16.msra.mxu0 %v1237_v17  ;;  %v1294_v31 = vld [vmem:[%s1667_s20 + $0x78] sm:$0xf0]  ;;  %v1284_v34 = vld [vmem:[%s1667_s20 + $0x50] sm:$0xf] }
  0x2c   : > { %v1293_v30 = vor.u32 %v1360_v28, %v1292_v27  ;;  %507 = vmatpush.bf16.msra.mxu1 %v1241_v18  ;;  %526 = vmatpush.bf16.msra.mxu2 %v1245_v22  ;;  %v1297_v32 = vor.u32 %v1356_v29, %v1294_v31  ;;  %v363_v33 = vld [vmem:[%s1687_s21 + $0x18] sm:$0xff]  ;;  %v1359_v35 = vld [vmem:[%s1667_s20 + $0x6c] sm:$0xf0]  ;;  %v360_v36 = vld [vmem:[%s1687_s21] sm:$0xff]  ;;  %vm1086_vm4 = vcmask 1043456   ;;  %s331_s12 = scalar_lea.vmem [#allocation5], %s1223_s30 }
  0x2d   : > { %v1285_v37 = vor.u32 %v1359_v35, %v1284_v34  ;;  %v1355_v38 = vld [vmem:[%s1667_s20 + $0x54] sm:$0xf]  ;;  %v1260_v40 = vld [vmem:[%s1667_s20 + $0x18] sm:$0xf]  ;;  %v1348_v43 = vld [vmem:[%s1667_s20 + $0x1c] sm:$0xf]  ;;  %381 = vperm.xlu0 %1429, %v363_v33  }
  0x2e   : > { %545 = vmatpush.bf16.msra.mxu3 %v1249_v26  ;;  %v1286_v39 = vld [vmem:[%s1667_s20 + $0x70] sm:$0xf0]  ;;  %1298 = vmatmul.msk.bf16.vlgmr.msra.gmra.mxu0 %vm474_vm0, %v1361_v24  ;;  %v1352_v42 = vld [vmem:[%s1667_s20 + $0x34] sm:$0xf0]  ;;  %v1262_v44 = vld [vmem:[%s1667_s20 + $0x38] sm:$0xf0] }
  0x2f   : > { %v1289_v41 = vor.u32 %v1355_v38, %v1286_v39  ;;  %1300 = vmatmul.msk.bf16.vlgmr.msra.gmra.mxu1 %vm474_vm0, %v1361_v24  ;;  %1302 = vmatmul.msk.bf16.vlgmr.msra.gmra.mxu2 %vm474_vm0, %v1361_v24  ;;  %v1261_v45 = vor.u32 %v1352_v42, %v1260_v40  ;;  %v1265_v46 = vor.u32 %v1348_v43, %v1262_v44  ;;  %v1252_v47 = vld [vmem:[%s1667_s20 + $0x10] sm:$0xf]  ;;  %v1347_v49 = vld [vmem:[%s1667_s20 + $0x14] sm:$0xf]  ;;  %v1362_v54 = vld [vmem:[%s1906_s2 + $0x8] sm:$0xff]  ;;  %s1363_s8 = sshll.u32 %s1536_s27, 4 }
  0x30   : > { %601 = vmatpush.bf16.msrb.mxu2 %v1293_v30  ;;  %v1351_v48 = vld [vmem:[%s1667_s20 + $0x2c] sm:$0xf0]  ;;  %v1254_v50 = vld [vmem:[%s1667_s20 + $0x30] sm:$0xf0]  ;;  %563 = vmatpush.bf16.msrb.mxu0 %v1285_v37  ;;  %v886_v55 = vld [vmem:[%s1910_s6] sm:$0xf]  ;;  %s1113_s19 = scalar_lea.hbm %s1911_s7, %s1363_s8 }
  0x31   : > { %1304 = vmatmul.msk.bf16.vlgmr.msra.gmra.mxu3 %vm474_vm0, %v1361_v24  ;;  %582 = vmatpush.bf16.msrb.mxu1 %v1289_v41  ;;  %v1253_v51 = vor.u32 %v1351_v48, %v1252_v47  ;;  %v1257_v52 = vor.u32 %v1347_v49, %v1254_v50  ;;  %v362_v53 = vld [vmem:[%s1687_s21 + $0x10] sm:$0xff]  ;;  %s1115_s20 = sshll.u32 %s331_s12, 4  ;;  %s1117_s9 = sshll.u32 %s1113_s19, 4  ;;  %s1116_s20 = int_to_ptr.vmem [resolvable:$true] %s1115_s20  ;;  %s1118_s9 = int_to_ptr.hbm [resolvable:$true] %s1117_s9 }
  0x32   : > { %620 = vmatpush.bf16.msrb.mxu3 %v1297_v32  ;;  %s1100_s27 = scalar_lea.sflag [#allocation4], %s1663_s28  ;;  %s1476_s11 = sshra.s32 %s1118_s9, 4  ;;  %s1477_s11 = int_to_ptr.hbm [resolvable:$true] %s1476_s11 }
  0x33   : > { %366 = vperm.xlu1 %1430, %v360_v36   ;;  %v1769_v36 = vld [vmem:[%s1907_s3] sm:$0xff]  ;;  %s1478_s13 = scalar_lea.hbm %s1477_s11, 16  ;;  %s1482_s22 = scalar_lea.hbm %s1911_s7, 32 }
  0x34   : > { %602 = vmatpush.bf16.msrb.mxu2 %v1261_v45  ;;  %564 = vmatpush.bf16.msrb.mxu0 %v1253_v51  ;;  %v668_v51 = vld [vmem:[%s1908_s4 + $0x8] sm:$0xff]  ;;  %p1479_p5 = scmp.ne.s32.totalorder %s1477_s11, %s1478_s13  ;;  %p1483_p8 = scmp.lt.s32.totalorder %s1477_s11, %s1911_s7 }
  0x35   : > { %583 = vmatpush.bf16.msrb.mxu1 %v1257_v52  ;;  %376 = vperm.xlu0 %1429, %v362_v53   ;;  %v1786_v52 = vld [vmem:[%s1907_s3 + $0x8] sm:$0xff]  ;;  %p1484_p10 = scmp.lt.s32.totalorder %s1482_s22, %s1478_s13 }
  0x36   : > { %621 = vmatpush.bf16.msrb.mxu3 %v1265_v46  ;;  %676 = vperm.xlu2 %1431, %v668_v51   ;;  %p1480_p6 = pnand %p1479_p5, %p1640_p9 }
  0x37   : > { %p1485_p13 = por %p1484_p10, %p1483_p8 }
  0x38   : > { %p1481_p7 = pneg %p1480_p6 }
  0x3a   : > { %p1486_p0 = pnand %p1485_p13, %p1481_p7 }
  0x3d   : > { %889 = vperm.xlu0 %1429, %v886_v55  }
  0x3e   : > { %1299 = vmatmul.msk.bf16.gmra.mxu0 %vm474_vm0, %v1362_v54 }
  0x3f   : > { %1301 = vmatmul.msk.bf16.gmra.mxu1 %vm474_vm0, %v1362_v54  ;;  %1303 = vmatmul.msk.bf16.gmra.mxu2 %vm474_vm0, %v1362_v54 }
  0x41   : > { %1305 = vmatmul.msk.bf16.gmra.mxu3 %vm474_vm0, %v1362_v54 }
  0x4e   : > { %1306 = vmatmul.msk.bf16.vlgmr.msrb.gmra.mxu0 %vm474_vm0, %v1361_v24 }
  0x4f   : > { %1308 = vmatmul.msk.bf16.vlgmr.msrb.gmra.mxu1 %vm474_vm0, %v1361_v24  ;;  %1310 = vmatmul.msk.bf16.vlgmr.msrb.gmra.mxu2 %vm474_vm0, %v1361_v24 }
  0x51   : > { %1312 = vmatmul.msk.bf16.vlgmr.msrb.gmra.mxu3 %vm474_vm0, %v1361_v24 }
  0x5e   : > { %1307 = vmatmul.msk.bf16.gmra.mxu0 %vm474_vm0, %v1362_v54 }
  0x5f   : > { %1309 = vmatmul.msk.bf16.gmra.mxu1 %vm474_vm0, %v1362_v54  ;;  %1311 = vmatmul.msk.bf16.gmra.mxu2 %vm474_vm0, %v1362_v54 }
  0x61   : > { %1313 = vmatmul.msk.bf16.gmra.mxu3 %vm474_vm0, %v1362_v54  ;;  %v667_v54 = vld [vmem:[%s1908_s4] sm:$0xff] }
  0x62   : > { %671 = vperm.xlu2 %1431, %v667_v54  }
  0x9d   : > { %v1743_v3 = vpop.permute.xlu1 %371 }
  0x9f   : > { %v1741_v62 = vpop.permute.xlu0 %381 }
  0xa5   : > { %v1752_v16 = vpop.permute.xlu1 %366 }
  0xa7   : > { %v1745_v4 = vpop.permute.xlu0 %376 }
  0xab   : > { %v490_v56 = vpop.f32.mrf.mxu0 }
  0xac   : > { %v509_v57 = vpop.f32.mrf.mxu1  ;;  %v491_v20 = vadd.f32 %v490_v56, %v1752_v16 }
  0xad   : > { %v510_v21 = vadd.f32 %v509_v57, %v1752_v16 }
  0xae   : > { %v633_v32 = vmax.f32 %v491_v20, 0.0 }
  0xaf   : > { %v634_v35 = vmax.f32 %v510_v21, 0.0 }
  0xb2   : > { %v528_v58 = vpop.f32.mrf.mxu2 }
  0xb3   : > { %v492_v60 = vpop.f32.mrf.mxu0  ;;  %v529_v39 = vadd.f32 %v528_v58, %v1752_v16 }
  0xb4   : > { %v547_v59 = vpop.f32.mrf.mxu3  ;;  %v511_v61 = vpop.f32.mrf.mxu1  ;;  %v493_v13 = vadd.f32 %v492_v60, %v1743_v3 }
  0xb5   : > { %v512_v17 = vadd.f32 %v511_v61, %v1743_v3  ;;  %v548_v41 = vadd.f32 %v547_v59, %v1752_v16  ;;  %v635_v46 = vmax.f32 %v529_v39, 0.0 }
  0xb6   : > { %v641_v22 = vmax.f32 %v493_v13, 0.0 }
  0xb7   : > { %v642_v24 = vmax.f32 %v512_v17, 0.0  ;;  %v636_v49 = vmax.f32 %v548_v41, 0.0 }
  0xba   : > { %v530_v63 = vpop.f32.mrf.mxu2 }
  0xbb   : > { %v495_v1 = vpop.f32.mrf.mxu0  ;;  %v531_v33 = vadd.f32 %v530_v63, %v1743_v3 }
  0xbc   : > { %v549_v0 = vpop.f32.mrf.mxu3  ;;  %v514_v2 = vpop.f32.mrf.mxu1  ;;  %v496_v6 = vadd.f32 %v495_v1, %v1745_v4 }
  0xbd   : > { %v515_v9 = vadd.f32 %v514_v2, %v1745_v4  ;;  %v550_v37 = vadd.f32 %v549_v0, %v1743_v3  ;;  %v643_v43 = vmax.f32 %v531_v33, 0.0 }
  0xbe   : > { %v649_v15 = vmax.f32 %v496_v6, 0.0 }
  0xbf   : > { %v650_v19 = vmax.f32 %v515_v9, 0.0  ;;  %v644_v44 = vmax.f32 %v550_v37, 0.0 }
  0xc2   : > { %v533_v5 = vpop.f32.mrf.mxu2 }
  0xc3   : > { %v497_v8 = vpop.f32.mrf.mxu0  ;;  %v534_v25 = vadd.f32 %v533_v5, %v1745_v4 }
  0xc4   : > { %v552_v7 = vpop.f32.mrf.mxu3  ;;  %v498_v10 = vadd.f32 %v497_v8, %v1741_v62  ;;  %v516_v11 = vpop.f32.mrf.mxu1 }
  0xc5   : > { %v517_v12 = vadd.f32 %v516_v11, %v1741_v62  ;;  %v553_v29 = vadd.f32 %v552_v7, %v1745_v4  ;;  %v651_v40 = vmax.f32 %v534_v25, 0.0 }
  0xc6   : > { %v657_v14 = vmax.f32 %v498_v10, 0.0 }
  0xc7   : > { %v658_v18 = vmax.f32 %v517_v12, 0.0  ;;  %v652_v42 = vmax.f32 %v553_v29, 0.0 }
  0xc8   : > { %697 = vmatpush.msra.mxu0 %v657_v14 }
  0xc9   : > { %720 = vmatpush.msra.mxu1 %v658_v18 }
  0xca   : > { %v535_v23 = vpop.f32.mrf.mxu2  ;;  %698 = vmatpush.msra.mxu0 %v649_v15 }
  0xcb   : > { %v536_v26 = vadd.f32 %v535_v23, %v1741_v62  ;;  %721 = vmatpush.msra.mxu1 %v650_v19  ;;  %v1759_v28 = vpop.f32.mrf.mxu0 }
  0xcc   : > { %v554_v27 = vpop.f32.mrf.mxu3  ;;  %v1763_v31 = vpop.f32.mrf.mxu1  ;;  %699 = vmatpush.msra.mxu0 %v641_v22  ;;  %v567_v9 = vadd.f32 %v1759_v28, %v1752_v16 }
  0xcd   : > { %v555_v30 = vadd.f32 %v554_v27, %v1741_v62  ;;  %v659_v34 = vmax.f32 %v536_v26, 0.0  ;;  %722 = vmatpush.msra.mxu1 %v642_v24  ;;  %v586_v11 = vadd.f32 %v1763_v31, %v1752_v16 }
  0xce   : > { %700 = vmatpush.msra.mxu0 %v633_v32  ;;  %v637_v20 = vmax.f32 %v567_v9, 0.0 }
  0xcf   : > { %v660_v38 = vmax.f32 %v555_v30, 0.0  ;;  %723 = vmatpush.msra.mxu1 %v634_v35  ;;  %743 = vmatpush.msra.mxu2 %v659_v34  ;;  %v638_v23 = vmax.f32 %v586_v11, 0.0 }
  0xd0   : > { %1314 = vmatmul.msk.f32.vlgmr.msra.gmra.mxu0 %vm474_vm0, %v1769_v36  ;;  %1316 = vmatmul.msk.f32.vlgmr.msra.gmra.mxu1 %vm474_vm0, %v1769_v36 }
  0xd1   : > { %766 = vmatpush.msra.mxu3 %v660_v38  ;;  %744 = vmatpush.msra.mxu2 %v651_v40 }
  0xd2   : > { %v604_v45 = vpop.f32.mrf.mxu2 }
  0xd3   : > { %767 = vmatpush.msra.mxu3 %v652_v42  ;;  %745 = vmatpush.msra.mxu2 %v643_v43  ;;  %v568_v48 = vpop.f32.mrf.mxu0  ;;  %v605_v28 = vadd.f32 %v604_v45, %v1752_v16 }
  0xd4   : > { %v1778_v47 = vpop.f32.mrf.mxu3  ;;  %v587_v50 = vpop.f32.mrf.mxu1  ;;  %v569_v5 = vadd.f32 %v568_v48, %v1743_v3  ;;  %v885_v48 = vld [vmem:[%s1909_s5] sm:$0xf] }
  0xd5   : > { %768 = vmatpush.msra.mxu3 %v644_v44  ;;  %746 = vmatpush.msra.mxu2 %v635_v46  ;;  %v588_v7 = vadd.f32 %v587_v50, %v1743_v3  ;;  %v639_v31 = vmax.f32 %v605_v28, 0.0 }
  0xd6   : > { %1318 = vmatmul.msk.f32.vlgmr.msra.gmra.mxu2 %vm474_vm0, %v1769_v36  ;;  %v645_v13 = vmax.f32 %v569_v5, 0.0 }
  0xd7   : > { %769 = vmatpush.msra.mxu3 %v636_v49  ;;  %v646_v15 = vmax.f32 %v588_v7, 0.0 }
  0xd8   : > { %1320 = vmatmul.msk.f32.vlgmr.msra.gmra.mxu3 %vm474_vm0, %v1769_v36  ;;  %1315 = vmatmul.msk.f32.gmra.mxu0 %vm474_vm0, %v1786_v52 }
  0xd9   : > { %1317 = vmatmul.msk.f32.gmra.mxu1 %vm474_vm0, %v1786_v52 }
  0xda   : > { %v606_v53 = vpop.f32.mrf.mxu2 }
  0xdb   : > { %v571_v56 = vpop.f32.mrf.mxu0  ;;  %v607_v24 = vadd.f32 %v606_v53, %v1743_v3 }
  0xdc   : > { %v625_v55 = vpop.f32.mrf.mxu3  ;;  %v590_v57 = vpop.f32.mrf.mxu1  ;;  %v572_v61 = vadd.f32 %v571_v56, %v1745_v4 }
  0xdd   : > { %v591_v1 = vadd.f32 %v590_v57, %v1745_v4  ;;  %v626_v26 = vadd.f32 %v625_v55, %v1743_v3 }
  0xde   : > { %1319 = vmatmul.msk.f32.gmra.mxu2 %vm474_vm0, %v1786_v52  ;;  %v653_v10 = vmax.f32 %v572_v61, 0.0 }
  0xdf   : > { %v654_v12 = vmax.f32 %v591_v1, 0.0  ;;  %v648_v3 = vmax.f32 %v626_v26, 0.0 }
  0xe0   : > { %1321 = vmatmul.msk.f32.gmra.mxu3 %vm474_vm0, %v1786_v52 }
  0xe2   : > { %v609_v58 = vpop.f32.mrf.mxu2 }
  0xe3   : > { %v573_v60 = vpop.f32.mrf.mxu0  ;;  %v610_v17 = vadd.f32 %v609_v58, %v1745_v4 }
  0xe4   : > { %v628_v59 = vpop.f32.mrf.mxu3  ;;  %v574_v63 = vadd.f32 %v573_v60, %v1741_v62  ;;  %v592_v0 = vpop.f32.mrf.mxu1 }
  0xe5   : > { %v593_v2 = vadd.f32 %v592_v0, %v1741_v62  ;;  %v629_v21 = vadd.f32 %v628_v59, %v1745_v4  ;;  %v655_v29 = vmax.f32 %v610_v17, 0.0  ;;  %v624_v4 = vadd.f32 %v1778_v47, %v1752_v16  ;;  %v1838_v16 = vpop.permute.xlu2 %676 }
  0xe6   : > { %v661_v6 = vmax.f32 %v574_v63, 0.0 }
  0xe7   : > { %v662_v8 = vmax.f32 %v593_v2, 0.0  ;;  %v656_v30 = vmax.f32 %v629_v21, 0.0  ;;  %v640_v32 = vmax.f32 %v624_v4, 0.0 }
  0xe8   : > { %789 = vmatpush.msrb.mxu0 %v661_v6 }
  0xe9   : > { %812 = vmatpush.msrb.mxu1 %v662_v8 }
  0xea   : > { %v611_v14 = vpop.f32.mrf.mxu2  ;;  %790 = vmatpush.msrb.mxu0 %v653_v10 }
  0xeb   : > { %v612_v18 = vadd.f32 %v611_v14, %v1741_v62  ;;  %813 = vmatpush.msrb.mxu1 %v654_v12 }
  0xec   : > { %v630_v19 = vpop.f32.mrf.mxu3  ;;  %791 = vmatpush.msrb.mxu0 %v645_v13 }
  0xed   : > { %v631_v22 = vadd.f32 %v630_v19, %v1741_v62  ;;  %v663_v25 = vmax.f32 %v612_v18, 0.0  ;;  %814 = vmatpush.msrb.mxu1 %v646_v15  ;;  %v647_v62 = vmax.f32 %v607_v24, 0.0  ;;  %v672_v35 = vpop.permute.xlu2 %671 }
  0xee   : > { %792 = vmatpush.msrb.mxu0 %v637_v20 }
  0xef   : > { %v664_v27 = vmax.f32 %v631_v22, 0.0  ;;  %815 = vmatpush.msrb.mxu1 %v638_v23  ;;  %835 = vmatpush.msrb.mxu2 %v663_v25  ;;  %v890_v25 = vpop.permute.xlu0 %889 }
  0xf0   : > { %1322 = vmatmul.msk.f32.vlgmr.msrb.gmra.mxu0 %vm474_vm0, %v1769_v36  ;;  %1324 = vmatmul.msk.f32.vlgmr.msrb.gmra.mxu1 %vm474_vm0, %v1769_v36 }
  0xf1   : > { %858 = vmatpush.msrb.mxu3 %v664_v27  ;;  %836 = vmatpush.msrb.mxu2 %v655_v29 }
  0xf3   : > { %859 = vmatpush.msrb.mxu3 %v656_v30  ;;  %837 = vmatpush.msrb.mxu2 %v647_v62 }
  0xf5   : > { %860 = vmatpush.msrb.mxu3 %v648_v3  ;;  %838 = vmatpush.msrb.mxu2 %v639_v31 }
  0xf6   : > { %1326 = vmatmul.msk.f32.vlgmr.msrb.gmra.mxu2 %vm474_vm0, %v1769_v36 }
  0xf7   : > { %861 = vmatpush.msrb.mxu3 %v640_v32 }
  0xf8   : > { %1328 = vmatmul.msk.f32.vlgmr.msrb.gmra.mxu3 %vm474_vm0, %v1769_v36  ;;  %1323 = vmatmul.msk.f32.gmra.mxu0 %vm474_vm0, %v1786_v52 }
  0xf9   : > { %1325 = vmatmul.msk.f32.gmra.mxu1 %vm474_vm0, %v1786_v52 }
  0xfe   : > { %1327 = vmatmul.msk.f32.gmra.mxu2 %vm474_vm0, %v1786_v52 }
 0x100   : > { %1329 = vmatmul.msk.f32.gmra.mxu3 %vm474_vm0, %v1786_v52 }
 0x14d   : > { %v702_v33 = vpop.f32.mrf.mxu0  ;;  %v725_v34 = vpop.f32.mrf.mxu1 }
 0x14e   : > { %v703_v37 = vadd.f32 %v702_v33, %v672_v35  ;;  %v726_v36 = vadd.f32 %v725_v34, %v672_v35 }
 0x150   : > { %v869_v43 = vmax.f32 %v703_v37, 0.0  ;;  %v870_v46 = vmax.f32 %v726_v36, 0.0 }
 0x155   : > { %v705_v38 = vpop.f32.mrf.mxu0 }
 0x156   : > { %v706_v39 = vadd.f32 %v705_v38, %v1838_v16  ;;  %v728_v40 = vpop.f32.mrf.mxu1 }
 0x157   : > { %v729_v41 = vadd.f32 %v728_v40, %v1838_v16 }
 0x158   : > { %v877_v42 = vmax.f32 %v706_v39, 0.0 }
 0x159   : > { %v878_v44 = vmax.f32 %v729_v41, 0.0  ;;  %v748_v45 = vpop.f32.mrf.mxu2 }
 0x15a   : > { %910 = vmatpush.msra.mxu0 %v877_v42  ;;  %v749_v49 = vadd.f32 %v748_v45, %v672_v35 }
 0x15b   : > { %v771_v47 = vpop.f32.mrf.mxu3  ;;  %930 = vmatpush.msra.mxu1 %v878_v44 }
 0x15c   : > { %911 = vmatpush.msra.mxu0 %v869_v43  ;;  %v772_v50 = vadd.f32 %v771_v47, %v672_v35  ;;  %v871_v55 = vmax.f32 %v749_v49, 0.0 }
 0x15d   : > { %931 = vmatpush.msra.mxu1 %v870_v46  ;;  %1330 = vmatmul.msk.f32.vlgmr.msra.gmra.mxu0 %vm892_vm1, %v885_v48 }
 0x15e   : > { %1331 = vmatmul.msk.f32.vlgmr.msra.gmra.mxu1 %vm892_vm1, %v885_v48  ;;  %v872_v57 = vmax.f32 %v772_v50, 0.0 }
 0x161   : > { %v751_v51 = vpop.f32.mrf.mxu2 }
 0x162   : > { %v752_v52 = vadd.f32 %v751_v51, %v1838_v16 }
 0x163   : > { %v774_v53 = vpop.f32.mrf.mxu3 }
 0x164   : > { %v775_v54 = vadd.f32 %v774_v53, %v1838_v16  ;;  %v879_v56 = vmax.f32 %v752_v52, 0.0 }
 0x166   : > { %v880_v58 = vmax.f32 %v775_v54, 0.0  ;;  %950 = vmatpush.msra.mxu2 %v879_v56 }
 0x168   : > { %970 = vmatpush.msra.mxu3 %v880_v58  ;;  %951 = vmatpush.msra.mxu2 %v871_v55 }
 0x169   : > { %1332 = vmatmul.msk.f32.vlgmr.msra.gmra.mxu2 %vm892_vm1, %v885_v48 }
 0x16a   : > { %971 = vmatpush.msra.mxu3 %v872_v57 }
 0x16b   : > { %1333 = vmatmul.msk.f32.vlgmr.msra.gmra.mxu3 %vm892_vm1, %v885_v48 }
 0x16d   : > { %v794_v59 = vpop.f32.mrf.mxu0  ;;  %v817_v60 = vpop.f32.mrf.mxu1 }
 0x16e   : > { %v795_v63 = vadd.f32 %v794_v59, %v672_v35  ;;  %v818_v2 = vadd.f32 %v817_v60, %v672_v35 }
 0x170   : > { %v873_v9 = vmax.f32 %v795_v63, 0.0  ;;  %v874_v11 = vmax.f32 %v818_v2, 0.0 }
 0x175   : > { %v797_v61 = vpop.f32.mrf.mxu0 }
 0x176   : > { %v798_v0 = vadd.f32 %v797_v61, %v1838_v16  ;;  %v820_v1 = vpop.f32.mrf.mxu1 }
 0x177   : > { %v821_v5 = vadd.f32 %v820_v1, %v1838_v16 }
 0x178   : > { %v881_v6 = vmax.f32 %v798_v0, 0.0 }
 0x179   : > { %v882_v7 = vmax.f32 %v821_v5, 0.0  ;;  %v840_v8 = vpop.f32.mrf.mxu2 }
 0x17a   : > { %990 = vmatpush.msrb.mxu0 %v881_v6  ;;  %v841_v13 = vadd.f32 %v840_v8, %v672_v35 }
 0x17b   : > { %v863_v10 = vpop.f32.mrf.mxu3  ;;  %1010 = vmatpush.msrb.mxu1 %v882_v7 }
 0x17c   : > { %991 = vmatpush.msrb.mxu0 %v873_v9  ;;  %v864_v17 = vadd.f32 %v863_v10, %v672_v35  ;;  %v875_v21 = vmax.f32 %v841_v13, 0.0 }
 0x17d   : > { %1011 = vmatpush.msrb.mxu1 %v874_v11  ;;  %1334 = vmatmul.msk.f32.vlgmr.msrb.gmra.mxu0 %vm892_vm1, %v885_v48 }
 0x17e   : > { %1335 = vmatmul.msk.f32.vlgmr.msrb.gmra.mxu1 %vm892_vm1, %v885_v48  ;;  %v876_v22 = vmax.f32 %v864_v17, 0.0 }
 0x181   : > { %v843_v12 = vpop.f32.mrf.mxu2 }
 0x182   : > { %v844_v14 = vadd.f32 %v843_v12, %v1838_v16 }
 0x183   : > { %v866_v15 = vpop.f32.mrf.mxu3 }
 0x184   : > { %v867_v18 = vadd.f32 %v866_v15, %v1838_v16  ;;  %v883_v19 = vmax.f32 %v844_v14, 0.0 }
 0x186   : > { %v884_v20 = vmax.f32 %v867_v18, 0.0  ;;  %1030 = vmatpush.msrb.mxu2 %v883_v19 }
 0x188   : > { %1050 = vmatpush.msrb.mxu3 %v884_v20  ;;  %1031 = vmatpush.msrb.mxu2 %v875_v21 }
 0x189   : > { %1336 = vmatmul.msk.f32.vlgmr.msrb.gmra.mxu2 %vm892_vm1, %v885_v48 }
 0x18a   : > { %1051 = vmatpush.msrb.mxu3 %v876_v22 }
 0x18b   : > { %1337 = vmatmul.msk.f32.vlgmr.msrb.gmra.mxu3 %vm892_vm1, %v885_v48 }
 0x1da   : > { %v913_v23 = vpop.f32.mrf.mxu0 }
 0x1db   : > { %v933_v24 = vpop.f32.mrf.mxu1  ;;  %v914_v26 = vadd.f32 %v913_v23, %v890_v25 }
 0x1dc   : > { %v934_v27 = vadd.f32 %v933_v24, %v890_v25 }
 0x1dd   : > { %v1056_v28 = vmax.f32 %v914_v26, 0.0 }
 0x1de   : > { %v1057_v29 = vmax.f32 %v934_v27, 0.0 }
 0x1e0   : > { %v1064_v3 = vpack.c.bf16 %v1057_v29, %v1056_v28 }
 0x1e2   : > { %v1072_v33 = vrot.slane %v1064_v3, 2 }
 0x1e4   : > { %v1081_v38 = vsel %vm1078_vm2, %v1064_v3, %v1072_v33 }
 0x1ec   : > { %v953_v4 = vpop.f32.mrf.mxu2 }
 0x1ed   : > { %v954_v30 = vadd.f32 %v953_v4, %v890_v25 }
 0x1ee   : > { %v973_v62 = vpop.f32.mrf.mxu3 }
 0x1ef   : > { %v974_v31 = vadd.f32 %v973_v62, %v890_v25  ;;  %v1058_v32 = vmax.f32 %v954_v30, 0.0 }
 0x1f1   : > { %v1059_v16 = vmax.f32 %v974_v31, 0.0 }
 0x1f3   : > { %v1065_v34 = vpack.c.bf16 %v1059_v16, %v1058_v32 }
 0x1f5   : > { %v1073_v35 = vrot.slane %v1065_v34, 4  ;;  %v1074_v37 = vrot.slane %v1065_v34, 6 }
 0x1f7   : > { %v1085_v36 = vsel %vm1082_vm3, %v1073_v35, %v1074_v37 }
 0x1f8   : > { %v1087_v39 = vsel %vm1086_vm4, %v1081_v38, %v1085_v36 }
 0x1f9   : > { %1097 = vst [vmem:[%s331_s12] sm:$0xff] %v1087_v39 }
 0x1fa   : > { %v993_v40 = vpop.f32.mrf.mxu0 }
 0x1fb   : > { %v1013_v41 = vpop.f32.mrf.mxu1  ;;  %v994_v42 = vadd.f32 %v993_v40, %v890_v25 }
 0x1fc   : > { %v1014_v43 = vadd.f32 %v1013_v41, %v890_v25 }
 0x1fd   : > { %v1060_v44 = vmax.f32 %v994_v42, 0.0 }
 0x1fe   : > { %v1061_v45 = vmax.f32 %v1014_v43, 0.0 }
 0x200   : > { %v1066_v49 = vpack.c.bf16 %v1061_v45, %v1060_v44 }
 0x202   : > { %v1075_v53 = vrot.slane %v1066_v49, 2 }
 0x204   : > { %v1090_v57 = vsel %vm1078_vm2, %v1066_v49, %v1075_v53 }
 0x20c   : > { %v1033_v46 = vpop.f32.mrf.mxu2 }
 0x20d   : > { %v1034_v47 = vadd.f32 %v1033_v46, %v890_v25 }
 0x20e   : > { %v1053_v48 = vpop.f32.mrf.mxu3 }
 0x20f   : > { %v1054_v50 = vadd.f32 %v1053_v48, %v890_v25  ;;  %v1062_v51 = vmax.f32 %v1034_v47, 0.0 }
 0x211   : > { %v1063_v52 = vmax.f32 %v1054_v50, 0.0 }
 0x213   : > { %v1067_v54 = vpack.c.bf16 %v1063_v52, %v1062_v51 }
 0x215   : > { %v1076_v55 = vrot.slane %v1067_v54, 4  ;;  %v1077_v56 = vrot.slane %v1067_v54, 6 }
 0x217   : > { %v1093_v58 = vsel %vm1082_vm3, %v1076_v55, %v1077_v56 }
 0x218   : > { %v1094_v59 = vsel %vm1086_vm4, %v1090_v57, %v1093_v58 }
 0x219   : > { %1098 = vst [vmem:[%s331_s12 + $0x8] sm:$0xff] %v1094_v59 }
 0x21a   : > { %1489 = shalt.err (!%p1486_p0)
}
 0x21b   : > { %1366 = dma.vmem_to_hbm [thread:$0]  (%p1640_p9), %s1116_s20, 256, %s1118_s9, %s1100_s27  }
 0x21c PF: > { %s1129_s28 = sand.u32 1, %s1524_s24   ;;  %p1373_p1 = pnand %p1217_p12, %p1647_p11 }
 0x21d   : > { %s1130_s12 = scalar_lea.sflag [#allocation4], %s1129_s28 }
 0x21e   : > { %p1374_p2 = pneg %p1373_p1 }
 0x220   : > { %1519 = dma.done.wait (%p1374_p2), %s1130_s12, 256  }
 0x221   : > { %1521 = vsyncadd (%p1374_p2), %s1130_s12, 4294967040  ;;  %s23_s29 = sadd.s32 1, %s1544_s29   ;;  %s1920_s27 = sld [smem:[#allocation8_spill]] }
 0x222   : > { %p20_p3 = scmp.ge.s32.totalorder %s23_s29, 4   ;;  %s1921_s28 = sld [smem:[#allocation9_spill]] }
 0x223   : > { %s1922_s24 = smov %s1528_s25  ;;  %s1923_s25 = smov %s1532_s26 }
 0x224   : > { %s1924_s26 = smov %s1645_s15  ;;  %22 = sbr.rel (!%p20_p3) target bundleno = 6 (0x6), region = 96 }
 0x229   :  { %1136 = vsyncpa [#allocation3], 1 }
 0x22a   :  { %1138 = vsyncpa [#allocation3 + $0x1], 1 }
 0x22b   :  { %1139 = vsyncpa [#allocation4], 1 }
 0x22c   :  { %1141 = vsyncpa [#allocation4 + $0x1], 1 }

</bundles_post_ra>
